<compile_context>
chip_gen: v5e
topology: v5e:2x2
jax: 0.10.0
libtpu: 0.0.40
codegen_flags: <defaults>
</compile_context>

<pallas_src>
import math

import jax
import jax.numpy as jnp
from jax.experimental import pallas as pl
from jax.experimental.pallas import tpu as pltpu


def _round_up(x, m):
    return ((x + m - 1) // m) * m


def graph_convolution(x, adj, weight, bias=None, *, tile_m=256, tile_k=512):
    """Fused Pallas GCN layer: out = adj @ (x @ weight) [+ bias]."""
    N, f_in = x.shape
    f_in_w, f_out = weight.shape
    assert f_in == f_in_w
    assert adj.shape == (N, N)

    # Lane-dense feature axis: pad F_out up to a multiple of 128.
    f_out_p = _round_up(f_out, 128)

    # Clamp tile sizes for small graphs while keeping TPU (8, 128) alignment.
    tile_m = min(tile_m, _round_up(N, 8))      # sublane-aligned row tile
    tile_k = min(tile_k, _round_up(N, 128))    # lane-aligned contraction tile
    n_pad_m = _round_up(N, tile_m)
    n_pad_k = _round_up(N, tile_k)

    # Zero padding: padded adj cols / x rows contribute nothing; padded output
    # rows are sliced off below.
    adj_p = jnp.pad(adj.astype(jnp.bfloat16),
                    ((0, n_pad_m - N), (0, n_pad_k - N)))
    x_p = jnp.pad(x.astype(jnp.float32), ((0, n_pad_k - N), (0, 0)))
    w_p = jnp.pad(weight.astype(jnp.float32), ((0, 0), (0, f_out_p - f_out)))

    has_bias = bias is not None
    if has_bias:
        b_p = jnp.pad(bias.astype(jnp.float32).reshape(1, f_out),
                      ((0, 0), (0, f_out_p - f_out)))

    nm = n_pad_m // tile_m
    nk = n_pad_k // tile_k

    def kernel(adj_ref, x_ref, w_ref, *rest):
        if has_bias:
            b_ref, out_ref, acc_ref = rest
        else:
            out_ref, acc_ref = rest
        k = pl.program_id(1)

        @pl.when(k == 0)
        def _():
            acc_ref[...] = jnp.zeros_like(acc_ref)

        # Support block for this K-tile. Recomputing X@W per row-tile is
        # negligible (f_in / tile_m extra work) next to streaming the N x N
        # adjacency, and avoids an HBM writeback/reload of `support`.
        s = jnp.dot(x_ref[...], w_ref[...], preferred_element_type=jnp.float32)
        acc_ref[...] += jnp.dot(adj_ref[...], s.astype(adj_ref.dtype),
                                preferred_element_type=jnp.float32)

        @pl.when(k == pl.num_programs(1) - 1)
        def _():
            res = acc_ref[...]
            if has_bias:
                res = res + b_ref[...]      # f32 epilogue (VPU)
            out_ref[...] = res.astype(out_ref.dtype)

    in_specs = [
        pl.BlockSpec((tile_m, tile_k), lambda i, k: (i, k)),   # adj tile (bf16)
        pl.BlockSpec((tile_k, f_in), lambda i, k: (k, 0)),     # x tile
        pl.BlockSpec((f_in, f_out_p), lambda i, k: (0, 0)),    # weight (resident)
    ]
    args = [adj_p, x_p, w_p]
    if has_bias:
        in_specs.append(pl.BlockSpec((1, f_out_p), lambda i, k: (0, 0)))
        args.append(b_p)

    out = pl.pallas_call(
        kernel,
        out_shape=jax.ShapeDtypeStruct((n_pad_m, f_out_p), jnp.float32),
        grid_spec=pltpu.PrefetchScalarGridSpec(
            num_scalar_prefetch=0,
            grid=(nm, nk),
            in_specs=in_specs,
            out_specs=pl.BlockSpec((tile_m, f_out_p), lambda i, k: (i, 0)),
            scratch_shapes=[pltpu.VMEM((tile_m, f_out_p), jnp.float32)],
        ),
        compiler_params=pltpu.CompilerParams(
            dimension_semantics=("parallel", "arbitrary"),
            vmem_limit_bytes=32 * 1024 * 1024,
        ),
    )(*args)

    return out[:N, :f_out]


if __name__ == "__main__":
    key = jax.random.PRNGKey(0)
    k_x, k_adj, k_w, k_b = jax.random.split(key, 4)

    # Small GCN: N nodes, in_features -> out_features.
    N, in_features, out_features = 512, 32, 16

    # Node features.
    x = jax.random.normal(k_x, (N, in_features), dtype=jnp.float32)

    # Dense normalized adjacency (torch.spmm treated as dense matmul).
    a = (jax.random.uniform(k_adj, (N, N)) < 0.05).astype(jnp.float32)
    a = a + jnp.eye(N, dtype=jnp.float32)          # self loops
    deg = jnp.sum(a, axis=1, keepdims=True)
    adj = a / deg                                   # row-normalized

    # Parameter init mirroring reset_parameters(): U(-stdv, stdv).
    stdv = 1.0 / math.sqrt(out_features)
    weight = jax.random.uniform(
        k_w, (in_features, out_features), minval=-stdv, maxval=stdv,
        dtype=jnp.float32)
    bias = jax.random.uniform(
        k_b, (out_features,), minval=-stdv, maxval=stdv, dtype=jnp.float32)

    out = graph_convolution(x, adj, weight, bias, tile_m=256, tile_k=256)
    out = jax.block_until_ready(out)

    # Reference check in plain JAX (f32). adj/support go through the MXU in
    # bf16 (f32 accumulate), so use bf16-level tolerance.
    ref = adj @ (x @ weight) + bias
    assert out.shape == (N, out_features)
    assert jnp.allclose(out, ref, atol=2e-2, rtol=2e-2), float(
        jnp.max(jnp.abs(out - ref)))

    print("KERNEL_OK")
</pallas_src>

<mosaic_0001>
module attributes {stable_mosaic.version = 11 : i64} {
  func.func @kernel(%arg0: i32, %arg1: i32, %arg2: memref<256x256xbf16, #tpu.memory_space<vmem>>, %arg3: memref<256x32xf32, #tpu.memory_space<vmem>>, %arg4: memref<32x128xf32, #tpu.memory_space<vmem>>, %arg5: memref<1x128xf32, #tpu.memory_space<vmem>>, %arg6: memref<256x128xf32, #tpu.memory_space<vmem>>, %arg7: memref<256x128xf32, #tpu.memory_space<vmem>>) attributes {dimension_semantics = [#tpu.dimension_semantics<parallel>, #tpu.dimension_semantics<arbitrary>], iteration_bounds = array<i64: 2, 2>, scalar_prefetch = 0 : i64, scratch_operands = 1 : i64, tpu.core_type = #tpu.core_type<tc>, window_params = [{transform_indices = @transform_0, window_bounds = array<i64: 256, 256>}, {transform_indices = @transform_1, window_bounds = array<i64: 256, 32>}, {pipeline_mode = #tpu.pipeline_mode<synchronous>, transform_indices = @transform_2, window_bounds = array<i64: 32, 128>}, {pipeline_mode = #tpu.pipeline_mode<synchronous>, transform_indices = @transform_3, window_bounds = array<i64: 1, 128>}, {transform_indices = @transform_4, window_bounds = array<i64: 256, 128>}]} {
    %c0_i32 = arith.constant 0 : i32
    %0 = arith.cmpi eq, %arg1, %c0_i32 : i32
    %1 = arith.extui %0 : i1 to i32
    %c0_i32_0 = arith.constant 0 : i32
    %2 = arith.cmpi ne, %1, %c0_i32_0 : i32
    scf.if %2 {
      %cst_12 = arith.constant 0.000000e+00 : f32
      %15 = vector.broadcast %cst_12 : f32 to vector<256x128xf32>
      %c0_13 = arith.constant 0 : index
      %c0_14 = arith.constant 0 : index
      %16 = vector.load %arg7[%c0_13, %c0_14] : memref<256x128xf32, #tpu.memory_space<vmem>>, vector<256x128xf32>
      tpu.vector_store %arg7[%c0_13, %c0_14], %15 {strides = array<i32>} : memref<256x128xf32, #tpu.memory_space<vmem>>, vector<256x128xf32>,
    } else {
    }
    %c0 = arith.constant 0 : index
    %c0_1 = arith.constant 0 : index
    %3 = vector.load %arg3[%c0, %c0_1] : memref<256x32xf32, #tpu.memory_space<vmem>>, vector<256x32xf32>
    %c0_2 = arith.constant 0 : index
    %c0_3 = arith.constant 0 : index
    %4 = vector.load %arg4[%c0_2, %c0_3] : memref<32x128xf32, #tpu.memory_space<vmem>>, vector<32x128xf32>
    %cst = arith.constant dense<0.000000e+00> : vector<256x128xf32>
    %5 = tpu.matmul %3, %4, %cst {dimension_numbers = #tpu.dot_dimension_numbers<[1], [0], [0], [1], [0, 0, 1, 1], [], []>} : vector<256x32xf32>, vector<32x128xf32>, vector<256x128xf32> -> vector<256x128xf32>
    %c0_4 = arith.constant 0 : index
    %c0_5 = arith.constant 0 : index
    %6 = vector.load %arg7[%c0_4, %c0_5] : memref<256x128xf32, #tpu.memory_space<vmem>>, vector<256x128xf32>
    %c0_6 = arith.constant 0 : index
    %c0_7 = arith.constant 0 : index
    %7 = vector.load %arg2[%c0_6, %c0_7] : memref<256x256xbf16, #tpu.memory_space<vmem>>, vector<256x256xbf16>
    %8 = arith.truncf %5 : vector<256x128xf32> to vector<256x128xbf16>
    %cst_8 = arith.constant dense<0.000000e+00> : vector<256x128xf32>
    %9 = tpu.matmul %7, %8, %cst_8 {dimension_numbers = #tpu.dot_dimension_numbers<[1], [0], [0], [1], [0, 0, 1, 1], [], []>} : vector<256x256xbf16>, vector<256x128xbf16>, vector<256x128xf32> -> vector<256x128xf32>
    %10 = arith.addf %6, %9 : vector<256x128xf32>
    %c0_9 = arith.constant 0 : index
    %c0_10 = arith.constant 0 : index
    %11 = vector.load %arg7[%c0_9, %c0_10] : memref<256x128xf32, #tpu.memory_space<vmem>>, vector<256x128xf32>
    tpu.vector_store %arg7[%c0_9, %c0_10], %10 {strides = array<i32>} : memref<256x128xf32, #tpu.memory_space<vmem>>, vector<256x128xf32>,
    %c1_i32 = arith.constant 1 : i32
    %12 = arith.cmpi eq, %arg1, %c1_i32 : i32
    %13 = arith.extui %12 : i1 to i32
    %c0_i32_11 = arith.constant 0 : i32
    %14 = arith.cmpi ne, %13, %c0_i32_11 : i32
    scf.if %14 {
      %c0_12 = arith.constant 0 : index
      %c0_13 = arith.constant 0 : index
      %15 = vector.load %arg7[%c0_12, %c0_13] : memref<256x128xf32, #tpu.memory_space<vmem>>, vector<256x128xf32>
      %c0_14 = arith.constant 0 : index
      %c0_15 = arith.constant 0 : index
      %16 = vector.load %arg5[%c0_14, %c0_15] : memref<1x128xf32, #tpu.memory_space<vmem>>, vector<1x128xf32>
      %17 = vector.broadcast %16 : vector<1x128xf32> to vector<256x128xf32>
      %18 = arith.addf %15, %17 : vector<256x128xf32>
      %c0_16 = arith.constant 0 : index
      %c0_17 = arith.constant 0 : index
      %19 = vector.load %arg6[%c0_16, %c0_17] : memref<256x128xf32, #tpu.memory_space<vmem>>, vector<256x128xf32>
      tpu.vector_store %arg6[%c0_16, %c0_17], %18 {strides = array<i32>} : memref<256x128xf32, #tpu.memory_space<vmem>>, vector<256x128xf32>,
    } else {
    }
    return
  }
  func.func @transform_0(%arg0: i32, %arg1: i32) -> (i32, i32) {
    %c0_i32 = arith.constant 0 : i32
    return %arg0, %arg1 : i32, i32
  }
  func.func @transform_1(%arg0: i32, %arg1: i32) -> (i32, i32) {
    %c0_i32 = arith.constant 0 : i32
    %c0_i32_0 = arith.constant 0 : i32
    return %arg1, %c0_i32 : i32, i32
  }
  func.func @transform_2(%arg0: i32, %arg1: i32) -> (i32, i32) {
    %c0_i32 = arith.constant 0 : i32
    %c0_i32_0 = arith.constant 0 : i32
    %c0_i32_1 = arith.constant 0 : i32
    return %c0_i32, %c0_i32_0 : i32, i32
  }
  func.func @transform_3(%arg0: i32, %arg1: i32) -> (i32, i32) {
    %c0_i32 = arith.constant 0 : i32
    %c0_i32_0 = arith.constant 0 : i32
    %c0_i32_1 = arith.constant 0 : i32
    return %c0_i32, %c0_i32_0 : i32, i32
  }
  func.func @transform_4(%arg0: i32, %arg1: i32) -> (i32, i32) {
    %c0_i32 = arith.constant 0 : i32
    %c0_i32_0 = arith.constant 0 : i32
    return %arg0, %c0_i32 : i32, i32
  }
}

</mosaic_0001>

<bundles_post_ra>
// kernel: tpu_custom_call.1
= control target key start
LH: loop header
LB: loop body
LE: loop exit
PB: predicated region body
PF: predicated region fallthrough
CT: control target
= control target key end

     0   :  { %9 = vsyncpa [#allocation4], 0  ;;  %s2194_s0 = inlined_call_operand.hbm [shape: bf16[512,512], index: 0, kind: input, shape index: {}]   ;;  %s2195_s1 = inlined_call_operand.vmem [shape: f32[512,32], index: 1, kind: input, shape index: {}]   ;;  %s2196_s2 = inlined_call_operand.vmem [shape: f32[32,128], index: 2, kind: input, shape index: {}]   ;;  %s2197_s3 = inlined_call_operand.vmem [shape: f32[1,128], index: 3, kind: input, shape index: {}]   ;;  %s2198_s4 = inlined_call_operand.hbm [shape: f32[512,128], index: 4, kind: output, shape index: {}]  }
   0x1   :  { %11 = vsyncpa [#allocation4 + $0x1], 0 }
   0x2   :  { %12 = vsyncpa [#allocation5], 0 }
   0x3   :  { %14 = vsyncpa [#allocation5 + $0x1], 0  ;;  %s1772_s15 = smov 0   ;;  %s1774_s16 = smov 0  }
   0x4   :  { %s1776_s17 = smov 0   ;;  %s1778_s18 = smov 0  }
   0x5   :  { %s1780_s19 = smov 0   ;;  %s1782_s20 = smov 0  }
   0x6   :  { %s1784_s21 = smov 0   ;;  %s1786_s22 = smov 0  }
   0x7   :  { %s1788_s23 = smov 0   ;;  %s1790_s24 = smov 0  }
   0x8   :  { %s1792_s25 = smov 0  }
   0x9 LB: > { %2205 = sst [smem:[#allocation9_spill]] %s1707_s17  ;;  %s1243_s26 = sadd.s32 4294967295, %s1739_s25   ;;  %s1739_s25 = sphi %s1792_s25, %s20_s25   ;;  %s1735_s24 = sphi %s1790_s24, %s2230_s24   ;;  %s1731_s23 = sphi %s1788_s23, %s2223_s23   ;;  %s1727_s22 = sphi %s1786_s22, %s2229_s22   ;;  %s1723_s21 = sphi %s1784_s21, %s2222_s21   ;;  %s1719_s20 = sphi %s1782_s20, %s2221_s20   ;;  %s1715_s19 = sphi %s1780_s19, %s2228_s19   ;;  %s1711_s18 = sphi %s1778_s18, %s2227_s18   ;;  %s1707_s17 = sphi %s1776_s17, %s2219_s17   ;;  %s1703_s16 = sphi %s1774_s16, %s2226_s16   ;;  %s1699_s15 = sphi %s1772_s15, %s2225_s15  }
   0xa   : > { %2206 = sst [smem:[#allocation10_spill]] %s1719_s20  ;;  %s1244_s27 = sadd.s32 4294967294, %s1739_s25  }
   0xb   : > { %2207 = sst [smem:[#allocation11_spill]] %s1731_s23  ;;  %s29_s28 = sadd.s32 1, %s1731_s23 }
   0xc   : > { %s32_s29 = sadd.s32 1, %s1735_s24  ;;  %p30_p0 = scmp.ge.s32.totalorder %s29_s28, 2 }
   0xd   : > { %s41_s30 = sadd.s32 1, %s1719_s20  ;;  %p48_p1 = scmp.ne.s32.totalorder %s1719_s20, %s1715_s19 }
   0xe   : > { %p49_p2 = scmp.eq.s32.totalorder %s1739_s25, 0  ;;  %s2232_s28 = smov (%p30_p0, %s29_s28), 0 }
   0xf   : > { %2208 = sst [smem:[#allocation12_spill]] %s2232_s28  ;;  %s2234_s29 = smov (!%p30_p0, %s32_s29), %s1735_s24 }
  0x10   : > { %s37_s5 = ssub.s32 %s1731_s23, %s2232_s28  ;;  %p1838_p3 = por %p49_p2, %p48_p1 }
  0x11   : > { %p34_p4 = scmp.ge.s32.totalorder %s2234_s29, 2  ;;  %p54_p5 = scmp.ne.s32.totalorder %s1715_s19, %s1711_s18 }
  0x12   : > { %p55_p6 = scmp.eq.s32.totalorder %s1243_s26, 0  ;;  %s135_s7 = sadd.s32 1, %s1707_s17 }
  0x13   : > { %s2236_s29 = smov (%p34_p4, %s2234_s29), 0  ;;  %p145_p8 = scmp.ne.s32.totalorder %s1707_s17, %s1703_s16 }
  0x14   : > { %2210 = sst [smem:[#allocation13_spill]] %s2236_s29  ;;  %p1846_p7 = por %p55_p6, %p54_p5 }
  0x15   : > { %s36_s9 = ssub.s32 %s1735_s24, %s2236_s29  ;;  %p146_p9 = scmp.eq.s32.totalorder %s1243_s26, 3 }
  0x16   : > { %s38_s10 = sor.u32 %s37_s5, %s36_s9  ;;  %p133_p10 = scmp.eq.s32.totalorder %s36_s9, 0 }
  0x17   : > { %p39_p11 = scmp.eq.s32.totalorder %s38_s10, 0  ;;  %p1854_p12 = por %p146_p9, %p145_p8 }
  0x18   : > { %s1859_s12 = scalar_select %p133_p10, %s1707_s17, %s135_s7  }
  0x19   : > { %s1862_s13 = scalar_select %p39_p11, %s1719_s20, %s41_s30  }
  0x1a   : > { %2213 = sst [smem:[#allocation14_spill]] %s1859_s12  ;;  %p151_p13 = scmp.ne.s32.totalorder %s1703_s16, %s1699_s15 }
  0x1b   : > { %2214 = sst [smem:[#allocation15_spill]] %s1862_s13  ;;  %p152_p0 = scmp.eq.s32.totalorder %s1244_s27, 3 }
  0x1c   : > { %p1490_p1 = scmp.lt.s32.totalorder %s1739_s25, 4  ;;  %s178_s18 = sand.u32 1, %s1719_s20  }
  0x1d   : > { %p1867_p2 = por %p152_p0, %p151_p13  ;;  %s1247_s26 = sshll.u32 %s178_s18, 8 }
  0x1e   : > { %s1249_s5 = sshll.u32 %s1731_s23, 1  ;;  %s1424_s9 = sshll.u32 %s1735_s24, 7 }
  0x1f   : > { %s2215_s14 = scalar_select %p1867_p2, 1, 0 }
  0x20   : > { %s182_s10 = scalar_lea.vmem [#allocation3], %s1247_s26  ;;  %s188_s28 = sadd.s32 %s1424_s9, %s1249_s5 }
  0x21   : > { %2216 = sst [smem:[#allocation16_spill]] %s2215_s14  ;;  %s193_s29 = sshll.u32 %s182_s10, 4  ;;  %s194_s29 = int_to_ptr.vmem [resolvable:$true] %s193_s29 }
  0x22   : > { %s1251_s7 = sshll.u32 %s188_s28, 2  ;;  %p1483_p4 = pnand %p1490_p1, %p1838_p3 }
  0x23   : > { %s190_s13 = scalar_lea.hbm %s2194_s0, %s1251_s7  ;;  %p1252_p5 = scmp.ge.s32.totalorder %s1739_s25, 1 }
  0x24   : > { %s191_s12 = sshll.u32 %s190_s13, 4  ;;  %s179_s17 = scalar_lea.sflag [#allocation4], %s178_s18  ;;  %s192_s12 = int_to_ptr.hbm [resolvable:$true] %s191_s12 }
  0x25   : > { %s1741_s20 = smov 256   ;;  %s1742_s14 = smov 128  }
  0x26   : > { %s1743_s23 = smov 8   ;;  %p210_p6 = scmp.lt.s32.totalorder %s1739_s25, 5 }
  0x27   : > { %1485 = dma.hbm_to_vmem [thread:$0]  (!%p1483_p4), %s192_s12, 4096, %s194_s29, %s179_s17, %s1741_s20, %s1742_s14, %s1743_s23  }
  0x28   : > { %p211_p8 = pnand %p1252_p5, %p210_p6 }
  0x29   : > { %s216_s28 = sand.u32 (!%p211_p8), 1, %s1715_s19  }
  0x2a   : > { %214 = sbr.rel (%p211_p8) target bundleno = 817 (0x331), region = 36  ;;  %s1253_s6 = sshll.u32 (!%p211_p8), %s216_s28, 8 }
  0x2b   : > { %s217_s26 = scalar_lea.sflag (!%p211_p8), [#allocation4], %s216_s28  ;;  %s1882_s5 = scalar_lea.vmem (!%p211_p8), [#allocation3], %s1253_s6 }
  0x2f   : > { %1690 = dma.done.wait (%p1846_p7), %s217_s26, 4096  }
  0x30   : > { %1692 = vsyncadd (%p1846_p7), %s217_s26, 4294963200  ;;  %s248_s13 = sand.u32 1, %s1703_s16   ;;  %s1255_s17 = sshll.u32 %s1723_s21, 5 }
  0x31   : > { %s1254_s20 = sshll.u32 %s248_s13, 8  ;;  %p254_p3 = scmp.lt.s32.totalorder %s1255_s17, 63 }
  0x32   : > { %s1897_s18 = scalar_lea.vmem [#allocation6], %s1254_s20  ;;  %p1257_p9 = scmp.ne.s32.totalorder %s1723_s21, 0 }
  0x33   : > { %s2238_s17 = smov (!%p254_p3, %s1255_s17), 63 }
  0x34   : > { %s1256_s23 = sshll.u32 %s2238_s17, 3  ;;  %263 = sbr.rel (%p1257_p9) target bundleno = 90 (0x5a), region = 44 }
  0x35   : > { %s1895_s14 = scalar_lea.vmem %s2195_s1, %s1256_s23 }
  0x39   : > { %v1744_v0 = vmov 0.0  }
  0x3a   : > { %264 = vst [vmem:[#allocation2 + $0xb0] sm:$0xff] %v1744_v0 }
  0x3b   : > { %265 = vst [vmem:[#allocation2] sm:$0xff] %v1744_v0 }
  0x3c   : > { %266 = vst [vmem:[#allocation2 + $0xd8] sm:$0xff] %v1744_v0 }
  0x3d   : > { %267 = vst [vmem:[#allocation2 + $0x18] sm:$0xff] %v1744_v0 }
  0x3e   : > { %268 = vst [vmem:[#allocation2 + $0x50] sm:$0xff] %v1744_v0 }
  0x3f   : > { %269 = vst [vmem:[#allocation2 + $0x68] sm:$0xff] %v1744_v0 }
  0x40   : > { %270 = vst [vmem:[#allocation2 + $0x30] sm:$0xff] %v1744_v0 }
  0x41   : > { %271 = vst [vmem:[#allocation2 + $0x48] sm:$0xff] %v1744_v0 }
  0x42   : > { %272 = vst [vmem:[#allocation2 + $0x80] sm:$0xff] %v1744_v0 }
  0x43   : > { %273 = vst [vmem:[#allocation2 + $0x88] sm:$0xff] %v1744_v0 }
  0x44   : > { %274 = vst [vmem:[#allocation2 + $0xe8] sm:$0xff] %v1744_v0 }
  0x45   : > { %275 = vst [vmem:[#allocation2 + $0xb8] sm:$0xff] %v1744_v0 }
  0x46   : > { %276 = vst [vmem:[#allocation2 + $0x60] sm:$0xff] %v1744_v0 }
  0x47   : > { %277 = vst [vmem:[#allocation2 + $0xf0] sm:$0xff] %v1744_v0 }
  0x48   : > { %278 = vst [vmem:[#allocation2 + $0x8] sm:$0xff] %v1744_v0 }
  0x49   : > { %279 = vst [vmem:[#allocation2 + $0x78] sm:$0xff] %v1744_v0 }
  0x4a   : > { %280 = vst [vmem:[#allocation2 + $0x38] sm:$0xff] %v1744_v0 }
  0x4b   : > { %281 = vst [vmem:[#allocation2 + $0x58] sm:$0xff] %v1744_v0 }
  0x4c   : > { %282 = vst [vmem:[#allocation2 + $0x40] sm:$0xff] %v1744_v0 }
  0x4d   : > { %283 = vst [vmem:[#allocation2 + $0xc8] sm:$0xff] %v1744_v0 }
  0x4e   : > { %284 = vst [vmem:[#allocation2 + $0xe0] sm:$0xff] %v1744_v0 }
  0x4f   : > { %285 = vst [vmem:[#allocation2 + $0x90] sm:$0xff] %v1744_v0 }
  0x50   : > { %286 = vst [vmem:[#allocation2 + $0x70] sm:$0xff] %v1744_v0 }
  0x51   : > { %287 = vst [vmem:[#allocation2 + $0xc0] sm:$0xff] %v1744_v0 }
  0x52   : > { %288 = vst [vmem:[#allocation2 + $0xa8] sm:$0xff] %v1744_v0 }
  0x53   : > { %289 = vst [vmem:[#allocation2 + $0xd0] sm:$0xff] %v1744_v0 }
  0x54   : > { %290 = vst [vmem:[#allocation2 + $0x10] sm:$0xff] %v1744_v0 }
  0x55   : > { %291 = vst [vmem:[#allocation2 + $0x28] sm:$0xff] %v1744_v0 }
  0x56   : > { %292 = vst [vmem:[#allocation2 + $0xa0] sm:$0xff] %v1744_v0 }
  0x57   : > { %293 = vst [vmem:[#allocation2 + $0xf8] sm:$0xff] %v1744_v0 }
  0x58   : > { %294 = vst [vmem:[#allocation2 + $0x20] sm:$0xff] %v1744_v0 }
  0x59   : > { %295 = vst [vmem:[#allocation2 + $0x98] sm:$0xff] %v1744_v0 }
  0x5a PF: > { %v331_v1 = vld [vmem:[%s2196_s2 + $0x18] sm:$0xff]  ;;  %v330_v2 = vld [vmem:[%s2196_s2 + $0x10] sm:$0xff]  ;;  %v329_v3 = vld [vmem:[%s2196_s2 + $0x8] sm:$0xff]  ;;  %vm332_vm0 = vcmask 261120   ;;  %p1418_p7 = scmp.ne.s32.totalorder %s1723_s21, 1 }
  0x5b   : > { %441 = vmatpush.msra.mxu0 %v331_v1  ;;  %1458 = vmatpush.msra.mxu3 %v331_v1  ;;  %v328_v4 = vld [vmem:[%s2196_s2] sm:$0xff]  ;;  %v297_v6 = vld [vmem:[%s1895_s14 + $0x8] sm:$0xff]  ;;  %v298_v7 = vld [vmem:[%s1895_s14 + $0x10] sm:$0xff] }
  0x5c   : > { %v296_v5 = vld [vmem:[%s1895_s14] sm:$0xff]  ;;  %v299_v8 = vld [vmem:[%s1895_s14 + $0x18] sm:$0xff]  ;;  %v301_v10 = vld [vmem:[%s1895_s14 + $0x28] sm:$0xff] }
  0x5d   : > { %442 = vmatpush.msra.mxu0 %v330_v2  ;;  %1459 = vmatpush.msra.mxu3 %v330_v2  ;;  %v300_v9 = vld [vmem:[%s1895_s14 + $0x20] sm:$0xff]  ;;  %v302_v11 = vld [vmem:[%s1895_s14 + $0x30] sm:$0xff]  ;;  %v303_v12 = vld [vmem:[%s1895_s14 + $0x38] sm:$0xff] }
  0x5e   : > { %v322_v13 = vld [vmem:[%s1895_s14 + $0xd0] sm:$0xff]  ;;  %v304_v14 = vld [vmem:[%s1895_s14 + $0x40] sm:$0xff]  ;;  %v323_v15 = vld [vmem:[%s1895_s14 + $0xd8] sm:$0xff] }
  0x5f   : > { %443 = vmatpush.msra.mxu0 %v329_v3  ;;  %1460 = vmatpush.msra.mxu3 %v329_v3  ;;  %v305_v16 = vld [vmem:[%s1895_s14 + $0x48] sm:$0xff]  ;;  %v324_v17 = vld [vmem:[%s1895_s14 + $0xe0] sm:$0xff]  ;;  %v306_v18 = vld [vmem:[%s1895_s14 + $0x50] sm:$0xff] }
  0x60   : > { %v325_v19 = vld [vmem:[%s1895_s14 + $0xe8] sm:$0xff]  ;;  %v307_v20 = vld [vmem:[%s1895_s14 + $0x58] sm:$0xff]  ;;  %v308_v21 = vld [vmem:[%s1895_s14 + $0x60] sm:$0xff] }
  0x61   : > { %444 = vmatpush.msra.mxu0 %v328_v4  ;;  %1461 = vmatpush.msra.mxu3 %v328_v4  ;;  %v326_v22 = vld [vmem:[%s1895_s14 + $0xf0] sm:$0xff]  ;;  %v309_v23 = vld [vmem:[%s1895_s14 + $0x68] sm:$0xff]  ;;  %v327_v24 = vld [vmem:[%s1895_s14 + $0xf8] sm:$0xff] }
  0x62   : > { %1258 = vmatmul.msk.f32.vlgmr.msra.gmra.mxu0 %vm332_vm0, %v296_v5  ;;  %1284 = vmatmul.msk.f32.vlgmr.msra.gmra.mxu3 %vm332_vm0, %v322_v13  ;;  %v310_v25 = vld [vmem:[%s1895_s14 + $0x70] sm:$0xff]  ;;  %v311_v26 = vld [vmem:[%s1895_s14 + $0x78] sm:$0xff]  ;;  %v312_v28 = vld [vmem:[%s1895_s14 + $0x80] sm:$0xff] }
  0x63   : > { %v313_v30 = vld [vmem:[%s1895_s14 + $0x88] sm:$0xff]  ;;  %v314_v32 = vld [vmem:[%s1895_s14 + $0x90] sm:$0xff]  ;;  %v315_v34 = vld [vmem:[%s1895_s14 + $0x98] sm:$0xff] }
  0x64   : > { %v316_v37 = vld [vmem:[%s1895_s14 + $0xa0] sm:$0xff]  ;;  %v317_v39 = vld [vmem:[%s1895_s14 + $0xa8] sm:$0xff]  ;;  %v318_v42 = vld [vmem:[%s1895_s14 + $0xb0] sm:$0xff] }
  0x65   : > { %v319_v44 = vld [vmem:[%s1895_s14 + $0xb8] sm:$0xff]  ;;  %v320_v47 = vld [vmem:[%s1895_s14 + $0xc0] sm:$0xff]  ;;  %v321_v50 = vld [vmem:[%s1895_s14 + $0xc8] sm:$0xff] }
  0x6a   : > { %1259 = vmatmul.msk.f32.gmra.mxu0 %vm332_vm0, %v297_v6  ;;  %1285 = vmatmul.msk.f32.gmra.mxu3 %vm332_vm0, %v323_v15  ;;  %v1450_v15 = vld [vmem:[%s1882_s5 + $0xc4] sm:$0xf0] }
  0x72   : > { %1260 = vmatmul.msk.f32.gmra.mxu0 %vm332_vm0, %v298_v7  ;;  %1286 = vmatmul.msk.f32.gmra.mxu3 %vm332_vm0, %v324_v17 }
  0x7a   : > { %1261 = vmatmul.msk.f32.gmra.mxu0 %vm332_vm0, %v299_v8  ;;  %1287 = vmatmul.msk.f32.gmra.mxu3 %vm332_vm0, %v325_v19  ;;  %v1426_v19 = vld [vmem:[%s1882_s5 + $0x4] sm:$0xf0] }
  0x82   : > { %1262 = vmatmul.msk.f32.gmra.mxu0 %vm332_vm0, %v300_v9  ;;  %1288 = vmatmul.msk.f32.gmra.mxu3 %vm332_vm0, %v326_v22  ;;  %v1452_v22 = vld [vmem:[%s1882_s5 + $0xd4] sm:$0xf0] }
  0x8a   : > { %1263 = vmatmul.msk.f32.gmra.mxu0 %vm332_vm0, %v301_v10  ;;  %1289 = vmatmul.msk.f32.gmra.mxu3 %vm332_vm0, %v327_v24 }
  0x92   : > { %1264 = vmatmul.msk.f32.gmra.mxu0 %vm332_vm0, %v302_v11 }
  0x9a   : > { %1265 = vmatmul.msk.f32.gmra.mxu0 %vm332_vm0, %v303_v12 }
  0xa2   : > { %1266 = vmatmul.msk.f32.gmra.mxu0 %vm332_vm0, %v304_v14  ;;  %v1388_v14 = vld [vmem:[%s1882_s5 + $0xc0] sm:$0xf] }
  0xaa   : > { %1267 = vmatmul.msk.f32.gmra.mxu0 %vm332_vm0, %v305_v16  ;;  %v1389_v16 = vor.u32 %v1450_v15, %v1388_v14  ;;  %v1455_v14 = vld [vmem:[%s1882_s5 + $0xf4] sm:$0xf]  ;;  %v1414_v15 = vld [vmem:[%s1882_s5 + $0xf8] sm:$0xf0] }
  0xb2   : > { %1268 = vmatmul.msk.f32.gmra.mxu0 %vm332_vm0, %v306_v18  ;;  %v1292_v18 = vld [vmem:[%s1882_s5] sm:$0xf] }
  0xba   : > { %1269 = vmatmul.msk.f32.gmra.mxu0 %vm332_vm0, %v307_v20  ;;  %v1293_v20 = vor.u32 %v1426_v19, %v1292_v18  ;;  %v1440_v18 = vld [vmem:[%s1882_s5 + $0x74] sm:$0xf0]  ;;  %v1435_v19 = vld [vmem:[%s1882_s5 + $0x54] sm:$0xf] }
  0xc2   : > { %1270 = vmatmul.msk.f32.gmra.mxu0 %vm332_vm0, %v308_v21  ;;  %v1396_v21 = vld [vmem:[%s1882_s5 + $0xd0] sm:$0xf] }
  0xc3   : > { %v1397_v24 = vor.u32 %v1452_v22, %v1396_v21 }
  0xca   : > { %1271 = vmatmul.msk.f32.gmra.mxu0 %vm332_vm0, %v309_v23 }
  0xd2   : > { %1272 = vmatmul.msk.f32.gmra.mxu0 %vm332_vm0, %v310_v25  ;;  %v1300_v25 = vld [vmem:[%s1882_s5 + $0x10] sm:$0xf] }
  0xda   : > { %1273 = vmatmul.msk.f32.gmra.mxu0 %vm332_vm0, %v311_v26  ;;  %v1428_v26 = vld [vmem:[%s1882_s5 + $0x14] sm:$0xf0] }
  0xdf   : > { %v1956_v27 = vpop.f32.mrf.mxu0 }
  0xe2   : > { %1274 = vmatmul.msk.f32.gmra.mxu0 %vm332_vm0, %v312_v28  ;;  %v1301_v28 = vor.u32 %v1428_v26, %v1300_v25  ;;  %v1437_v25 = vld [vmem:[%s1882_s5 + $0x64] sm:$0xf]  ;;  %v1342_v26 = vld [vmem:[%s1882_s5 + $0x68] sm:$0xf0] }
  0xe5   : > { %v524_v48 = vpop.f32.mrf.mxu3 }
  0xe7   : > { %v1960_v29 = vpop.f32.mrf.mxu0 }
  0xe8   : > { %v606_v9 = vpack.c.bf16 %v1960_v29, %v1956_v27 }
  0xea   : > { %1275 = vmatmul.msk.f32.gmra.mxu0 %vm332_vm0, %v313_v30 }
  0xed   : > { %v527_v51 = vpop.f32.mrf.mxu3 }
  0xee   : > { %v619_v63 = vpack.c.bf16 %v527_v51, %v524_v48  ;;  %v1302_v48 = vld [vmem:[%s1882_s5 + $0x18] sm:$0xf0]  ;;  %v1449_v51 = vld [vmem:[%s1882_s5 + $0xc4] sm:$0xf] }
  0xef   : > { %v452_v31 = vpop.f32.mrf.mxu0 }
  0xf2   : > { %1276 = vmatmul.msk.f32.gmra.mxu0 %vm332_vm0, %v314_v32  ;;  %v1454_v32 = vld [vmem:[%s1882_s5 + $0xe4] sm:$0xf0] }
  0xf5   : > { %v530_v53 = vpop.f32.mrf.mxu3 }
  0xf7   : > { %v455_v33 = vpop.f32.mrf.mxu0 }
  0xf8   : > { %v607_v35 = vpack.c.bf16 %v455_v33, %v452_v31  ;;  %v1404_v31 = vld [vmem:[%s1882_s5 + $0xe0] sm:$0xf] }
  0xfa   : > { %1277 = vmatmul.msk.f32.gmra.mxu0 %vm332_vm0, %v315_v34  ;;  %v1405_v34 = vor.u32 %v1454_v32, %v1404_v31 }
  0xfd   : > { %v533_v55 = vpop.f32.mrf.mxu3 }
  0xfe   : > { %v620_v61 = vpack.c.bf16 %v533_v55, %v530_v53  ;;  %v1434_v55 = vld [vmem:[%s1882_s5 + $0x44] sm:$0xf0] }
  0xff   : > { %v458_v36 = vpop.f32.mrf.mxu0 }
 0x102   : > { %1278 = vmatmul.msk.f32.gmra.mxu0 %vm332_vm0, %v316_v37  ;;  %v1430_v37 = vld [vmem:[%s1882_s5 + $0x24] sm:$0xf0] }
 0x105   : > { %v536_v57 = vpop.f32.mrf.mxu3 }
 0x107   : > { %v461_v38 = vpop.f32.mrf.mxu0 }
 0x108   : > { %v608_v40 = vpack.c.bf16 %v461_v38, %v458_v36  ;;  %v1308_v36 = vld [vmem:[%s1882_s5 + $0x20] sm:$0xf]  ;;  %v1425_v38 = vld [vmem:[%s1882_s5 + $0x4] sm:$0xf] }
 0x10a   : > { %1279 = vmatmul.msk.f32.gmra.mxu0 %vm332_vm0, %v317_v39  ;;  %v1294_v39 = vld [vmem:[%s1882_s5 + $0x8] sm:$0xf0] }
 0x10d   : > { %v539_v59 = vpop.f32.mrf.mxu3 }
 0x10e   : > { %v621_v60 = vpack.c.bf16 %v539_v59, %v536_v57  ;;  %v1310_v57 = vld [vmem:[%s1882_s5 + $0x28] sm:$0xf0] }
 0x10f   : > { %v464_v41 = vpop.f32.mrf.mxu0 }
 0x110   : > { %871 = vmatpush.bf16.msra.mxu2 %v621_v60 }
 0x112   : > { %1280 = vmatmul.msk.f32.gmra.mxu0 %vm332_vm0, %v318_v42  ;;  %v1412_v42 = vld [vmem:[%s1882_s5 + $0xf0] sm:$0xf] }
 0x114   : > { %872 = vmatpush.bf16.msra.mxu2 %v620_v61 }
 0x117   : > { %v467_v43 = vpop.f32.mrf.mxu0 }
 0x118   : > { %v609_v45 = vpack.c.bf16 %v467_v43, %v464_v41  ;;  %873 = vmatpush.bf16.msra.mxu2 %v619_v63  ;;  %v1297_v41 = vor.u32 %v1425_v38, %v1294_v39  ;;  %v1456_v43 = vld [vmem:[%s1882_s5 + $0xf4] sm:$0xf0] }
 0x119   : > { %v1444_v38 = vld [vmem:[%s1882_s5 + $0x94] sm:$0xf0] }
 0x11a   : > { %1281 = vmatmul.msk.f32.gmra.mxu0 %vm332_vm0, %v319_v44  ;;  %v1413_v44 = vor.u32 %v1456_v43, %v1412_v42  ;;  %v1441_v43 = vld [vmem:[%s1882_s5 + $0x84] sm:$0xf] }
 0x11f   : > { %v470_v46 = vpop.f32.mrf.mxu0 }
 0x122   : > { %1282 = vmatmul.msk.f32.gmra.mxu0 %vm332_vm0, %v320_v47  ;;  %v1427_v47 = vld [vmem:[%s1882_s5 + $0x14] sm:$0xf] }
 0x127   : > { %v473_v49 = vpop.f32.mrf.mxu0 }
 0x128   : > { %v610_v5 = vpack.c.bf16 %v473_v49, %v470_v46  ;;  %v1432_v46 = vld [vmem:[%s1882_s5 + $0x34] sm:$0xf0] }
 0x12a   : > { %1283 = vmatmul.msk.f32.gmra.mxu0 %vm332_vm0, %v321_v50  ;;  %v1305_v50 = vor.u32 %v1427_v47, %v1302_v48  ;;  %v1446_v47 = vld [vmem:[%s1882_s5 + $0xa4] sm:$0xf0] }
 0x12f   : > { %v476_v52 = vpop.f32.mrf.mxu0 }
 0x137   : > { %v479_v54 = vpop.f32.mrf.mxu0 }
 0x138   : > { %v611_v4 = vpack.c.bf16 %v479_v54, %v476_v52  ;;  %v1390_v52 = vld [vmem:[%s1882_s5 + $0xc8] sm:$0xf0]  ;;  %v1324_v54 = vld [vmem:[%s1882_s5 + $0x40] sm:$0xf] }
 0x139   : > { %v1393_v53 = vor.u32 %v1449_v51, %v1390_v52  ;;  %v542_v51 = vld [vmem:[#allocation2 + $0xb0] sm:$0xff] }
 0x13f   : > { %v482_v56 = vpop.f32.mrf.mxu0 }
 0x147   : > { %v485_v58 = vpop.f32.mrf.mxu0 }
 0x148   : > { %v612_v2 = vpack.c.bf16 %v485_v58, %v482_v56  ;;  %v1429_v56 = vld [vmem:[%s1882_s5 + $0x24] sm:$0xf]  ;;  %v1325_v58 = vor.u32 %v1434_v55, %v1324_v54 }
 0x149   : > { %v1313_v59 = vor.u32 %v1429_v56, %v1310_v57  ;;  %v1443_v57 = vld [vmem:[%s1882_s5 + $0x94] sm:$0xf] }
 0x14f   : > { %v488_v62 = vpop.f32.mrf.mxu0 }
 0x157   : > { %v491_v0 = vpop.f32.mrf.mxu0 }
 0x158   : > { %v613_v1 = vpack.c.bf16 %v491_v0, %v488_v62  ;;  %v1436_v0 = vld [vmem:[%s1882_s5 + $0x54] sm:$0xf0] }
 0x15a   : > { %782 = vmatpush.bf16.msra.mxu1 %v613_v1  ;;  %1462 = vmatpush.bf16.msrb.mxu3 %v613_v1  ;;  %v1431_v1 = vld [vmem:[%s1882_s5 + $0x34] sm:$0xf] }
 0x15e   : > { %783 = vmatpush.bf16.msra.mxu1 %v612_v2  ;;  %1463 = vmatpush.bf16.msrb.mxu3 %v612_v2  ;;  %v1318_v2 = vld [vmem:[%s1882_s5 + $0x38] sm:$0xf0] }
 0x15f   : > { %v494_v3 = vpop.f32.mrf.mxu0 }
 0x162   : > { %784 = vmatpush.bf16.msra.mxu1 %v611_v4  ;;  %1464 = vmatpush.bf16.msrb.mxu3 %v611_v4  ;;  %v1321_v4 = vor.u32 %v1431_v1, %v1318_v2 }
 0x166   : > { %785 = vmatpush.bf16.msra.mxu1 %v610_v5  ;;  %1465 = vmatpush.bf16.msrb.mxu3 %v610_v5  ;;  %v1453_v5 = vld [vmem:[%s1882_s5 + $0xe4] sm:$0xf] }
 0x167   : > { %v497_v6 = vpop.f32.mrf.mxu0 }
 0x168   : > { %v614_v7 = vpack.c.bf16 %v497_v6, %v494_v3  ;;  %v1406_v6 = vld [vmem:[%s1882_s5 + $0xe8] sm:$0xf0] }
 0x16a   : > { %786 = vmatpush.bf16.msra.mxu1 %v609_v45  ;;  %1466 = vmatpush.bf16.msrb.mxu3 %v609_v45  ;;  %v1316_v45 = vld [vmem:[%s1882_s5 + $0x30] sm:$0xf] }
 0x16b   : > { %v1317_v49 = vor.u32 %v1432_v46, %v1316_v45  ;;  %v1372_v46 = vld [vmem:[%s1882_s5 + $0xa0] sm:$0xf] }
 0x16e   : > { %787 = vmatpush.bf16.msra.mxu1 %v608_v40  ;;  %1467 = vmatpush.bf16.msrb.mxu3 %v608_v40  ;;  %v1309_v40 = vor.u32 %v1430_v37, %v1308_v36  ;;  %v1364_v37 = vld [vmem:[%s1882_s5 + $0x90] sm:$0xf] }
 0x16f   : > { %v500_v8 = vpop.f32.mrf.mxu0 }
 0x172   : > { %788 = vmatpush.bf16.msra.mxu1 %v607_v35  ;;  %1468 = vmatpush.bf16.msrb.mxu3 %v607_v35 }
 0x176   : > { %789 = vmatpush.bf16.msra.mxu1 %v606_v9  ;;  %1469 = vmatpush.bf16.msrb.mxu3 %v606_v9  ;;  %v1438_v9 = vld [vmem:[%s1882_s5 + $0x64] sm:$0xf0] }
 0x177   : > { %v503_v10 = vpop.f32.mrf.mxu0 }
 0x178   : > { %v615_v35 = vpack.c.bf16 %v503_v10, %v500_v8  ;;  %v1340_v8 = vld [vmem:[%s1882_s5 + $0x60] sm:$0xf]  ;;  %v1433_v10 = vld [vmem:[%s1882_s5 + $0x44] sm:$0xf] }
 0x179   : > { %850 = vmatmul.bf16.vlgmr.msrb.gmra.mxu3 %v1389_v16  ;;  %790 = vmatmul.bf16.vlgmr.msra.gmra.mxu1 %v1293_v20  ;;  %v1417_v16 = vor.u32 %v1455_v14, %v1414_v15  ;;  %v1334_v20 = vld [vmem:[%s1882_s5 + $0x58] sm:$0xf0] }
 0x17a   : > { %1470 = vmatpush.bf16.msra.mxu3 %v621_v60  ;;  %v1451_v60 = vld [vmem:[%s1882_s5 + $0xd4] sm:$0xf]  ;;  %v1337_v22 = vor.u32 %v1435_v19, %v1334_v20  ;;  %v566_v19 = vld [vmem:[#allocation2 + $0xa8] sm:$0xff] }
 0x17e   : > { %1471 = vmatpush.bf16.msra.mxu3 %v620_v61  ;;  %v1398_v61 = vld [vmem:[%s1882_s5 + $0xd8] sm:$0xf0] }
 0x17f   : > { %v506_v11 = vpop.f32.mrf.mxu0  ;;  %v1401_v62 = vor.u32 %v1451_v60, %v1398_v61  ;;  %v1380_v61 = vld [vmem:[%s1882_s5 + $0xb0] sm:$0xf] }
 0x182   : > { %1472 = vmatpush.bf16.msra.mxu3 %v619_v63  ;;  %v1332_v63 = vld [vmem:[%s1882_s5 + $0x50] sm:$0xf] }
 0x183   : > { %v1333_v3 = vor.u32 %v1436_v0, %v1332_v63 }
 0x187   : > { %v509_v12 = vpop.f32.mrf.mxu0 }
 0x188   : > { %v616_v33 = vpack.c.bf16 %v509_v12, %v506_v11  ;;  %v1326_v11 = vld [vmem:[%s1882_s5 + $0x48] sm:$0xf0]  ;;  %v1341_v12 = vor.u32 %v1438_v9, %v1340_v8 }
 0x189   : > { %855 = vmatmul.bf16.gmra.mxu3 %v1397_v24  ;;  %795 = vmatmul.bf16.gmra.mxu1 %v1301_v28  ;;  %v1442_v24 = vld [vmem:[%s1882_s5 + $0x84] sm:$0xf0] }
 0x18f   : > { %v512_v13 = vpop.f32.mrf.mxu0 }
 0x197   : > { %v515_v17 = vpop.f32.mrf.mxu0 }
 0x198   : > { %v617_v30 = vpack.c.bf16 %v515_v17, %v512_v13  ;;  %v1329_v13 = vor.u32 %v1433_v10, %v1326_v11  ;;  %v1348_v17 = vld [vmem:[%s1882_s5 + $0x70] sm:$0xf]  ;;  %v1445_v10 = vld [vmem:[%s1882_s5 + $0xa4] sm:$0xf]  ;;  %v1374_v11 = vld [vmem:[%s1882_s5 + $0xa8] sm:$0xf0] }
 0x199   : > { %860 = vmatmul.bf16.gmra.mxu3 %v1405_v34  ;;  %800 = vmatmul.bf16.gmra.mxu1 %v1309_v40  ;;  %v1349_v21 = vor.u32 %v1440_v18, %v1348_v17  ;;  %v1350_v34 = vld [vmem:[%s1882_s5 + $0x78] sm:$0xf0]  ;;  %v1365_v40 = vor.u32 %v1444_v38, %v1364_v37 }
 0x19f   : > { %v518_v23 = vpop.f32.mrf.mxu0 }
 0x1a7   : > { %v521_v27 = vpop.f32.mrf.mxu0 }
 0x1a8   : > { %v618_v29 = vpack.c.bf16 %v521_v27, %v518_v23  ;;  %v1356_v23 = vld [vmem:[%s1882_s5 + $0x80] sm:$0xf] }
 0x1a9   : > { %865 = vmatmul.bf16.gmra.mxu3 %v1413_v44  ;;  %805 = vmatmul.bf16.gmra.mxu1 %v1317_v49  ;;  %v1357_v27 = vor.u32 %v1442_v24, %v1356_v23  ;;  %v1358_v44 = vld [vmem:[%s1882_s5 + $0x88] sm:$0xf0]  ;;  %v1373_v49 = vor.u32 %v1446_v47, %v1372_v46 }
 0x1aa   : > { %874 = vmatpush.bf16.msra.mxu2 %v618_v29  ;;  %1473 = vmatpush.bf16.msra.mxu3 %v618_v29  ;;  %v1361_v48 = vor.u32 %v1441_v43, %v1358_v44  ;;  %v568_v43 = vld [vmem:[#allocation2 + $0x10] sm:$0xff] }
 0x1ae   : > { %875 = vmatpush.bf16.msra.mxu2 %v617_v30  ;;  %1474 = vmatpush.bf16.msra.mxu3 %v617_v30  ;;  %v1345_v30 = vor.u32 %v1437_v25, %v1342_v26 }
 0x1b2   : > { %876 = vmatpush.bf16.msra.mxu2 %v616_v33  ;;  %1475 = vmatpush.bf16.msra.mxu3 %v616_v33  ;;  %v1439_v33 = vld [vmem:[%s1882_s5 + $0x74] sm:$0xf] }
 0x1b3   : > { %v1353_v39 = vor.u32 %v1439_v33, %v1350_v34  ;;  %v1447_v33 = vld [vmem:[%s1882_s5 + $0xb4] sm:$0xf]  ;;  %v1382_v34 = vld [vmem:[%s1882_s5 + $0xb8] sm:$0xf0] }
 0x1b6   : > { %877 = vmatpush.bf16.msra.mxu2 %v615_v35  ;;  %1476 = vmatpush.bf16.msra.mxu3 %v615_v35 }
 0x1b9   : > { %810 = vmatmul.bf16.gmra.mxu1 %v1325_v58  ;;  %v1366_v58 = vld [vmem:[%s1882_s5 + $0x98] sm:$0xf0] }
 0x1ba   : > { %878 = vmatpush.bf16.msra.mxu2 %v614_v7  ;;  %1477 = vmatpush.bf16.msra.mxu3 %v614_v7  ;;  %v1409_v7 = vor.u32 %v1453_v5, %v1406_v6  ;;  %v1369_v0 = vor.u32 %v1443_v57, %v1366_v58  ;;  %v544_v5 = vld [vmem:[#allocation2 + $0xd8] sm:$0xff] }
 0x1bd   : > { %879 = vmatmul.bf16.vlgmr.msra.gmra.mxu2 %v1297_v41  ;;  %939 = vmatmul.bf16.vlgmr.msra.gmra.mxu3 %v1393_v53 }
 0x1c9   : > { %815 = vmatmul.bf16.gmra.mxu1 %v1333_v3 }
 0x1cd   : > { %884 = vmatmul.bf16.gmra.mxu2 %v1305_v50  ;;  %944 = vmatmul.bf16.gmra.mxu3 %v1401_v62  ;;  %v1448_v62 = vld [vmem:[%s1882_s5 + $0xb4] sm:$0xf0] }
 0x1ce   : > { %v1381_v2 = vor.u32 %v1448_v62, %v1380_v61 }
 0x1d9   : > { %820 = vmatmul.bf16.gmra.mxu1 %v1341_v12  ;;  %v545_v12 = vld [vmem:[#allocation2 + $0x18] sm:$0xff] }
 0x1dd   : > { %889 = vmatmul.bf16.gmra.mxu2 %v1313_v59  ;;  %949 = vmatmul.bf16.gmra.mxu3 %v1409_v7  ;;  %v543_v59 = vld [vmem:[#allocation2] sm:$0xff] }
 0x1e9   : > { %825 = vmatmul.bf16.gmra.mxu1 %v1349_v21 }
 0x1ed   : > { %894 = vmatmul.bf16.gmra.mxu2 %v1321_v4  ;;  %954 = vmatmul.bf16.gmra.mxu3 %v1417_v16  ;;  %v1377_v16 = vor.u32 %v1445_v10, %v1374_v11 }
 0x1f6   : > { %v791_v28 = vpop.f32.mrf.mxu1 }
 0x1f9   : > { %830 = vmatmul.bf16.gmra.mxu1 %v1357_v27  ;;  %v567_v27 = vld [vmem:[#allocation2 + $0xd0] sm:$0xff] }
 0x1fc   : > { %v2030_v29 = vpop.f32.mrf.mxu3 }
 0x1fd   : > { %899 = vmatmul.bf16.gmra.mxu2 %v1329_v13 }
 0x1fe   : > { %v793_v31 = vpop.f32.mrf.mxu1 }
 0x204   : > { %v2032_v32 = vpop.f32.mrf.mxu3 }
 0x206   : > { %v796_v35 = vpop.f32.mrf.mxu1 }
 0x209   : > { %835 = vmatmul.bf16.gmra.mxu1 %v1365_v40 }
 0x20c   : > { %v2036_v36 = vpop.f32.mrf.mxu3 }
 0x20d   : > { %904 = vmatmul.bf16.gmra.mxu2 %v1337_v22  ;;  %v546_v22 = vld [vmem:[#allocation2 + $0x50] sm:$0xff] }
 0x20e   : > { %v798_v41 = vpop.f32.mrf.mxu1 }
 0x214   : > { %v2040_v42 = vpop.f32.mrf.mxu3 }
 0x216   : > { %v801_v50 = vpop.f32.mrf.mxu1 }
 0x219   : > { %840 = vmatmul.bf16.gmra.mxu1 %v1373_v49 }
 0x21c   : > { %v2044_v45 = vpop.f32.mrf.mxu3 }
 0x21d   : > { %909 = vmatmul.bf16.gmra.mxu2 %v1345_v30 }
 0x21e   : > { %v803_v56 = vpop.f32.mrf.mxu1 }
 0x224   : > { %v2048_v54 = vpop.f32.mrf.mxu3 }
 0x226   : > { %v806_v4 = vpop.f32.mrf.mxu1 }
 0x229   : > { %845 = vmatmul.bf16.gmra.mxu1 %v1381_v2 }
 0x22c   : > { %v2054_v1 = vpop.f32.mrf.mxu3 }
 0x22d   : > { %914 = vmatmul.bf16.gmra.mxu2 %v1353_v39 }
 0x22e   : > { %v808_v14 = vpop.f32.mrf.mxu1 }
 0x234   : > { %v2056_v8 = vpop.f32.mrf.mxu3 }
 0x236   : > { %v811_v26 = vpop.f32.mrf.mxu1 }
 0x23d   : > { %919 = vmatmul.bf16.gmra.mxu2 %v1361_v48 }
 0x240   : > { %v880_v52 = vpop.f32.mrf.mxu2  ;;  %v940_v17 = vpop.f32.mrf.mxu3 }
 0x241   : > { %v881_v53 = vadd.f32 %v880_v52, %v791_v28  ;;  %v941_v20 = vadd.f32 %v940_v17, %v2030_v29  ;;  %v1385_v29 = vor.u32 %v1447_v33, %v1382_v34  ;;  %v552_v17 = vld [vmem:[#allocation2 + $0xe8] sm:$0xff] }
 0x243   : > { %v960_v55 = vadd.f32 %v881_v53, %v542_v51  ;;  %v984_v21 = vadd.f32 %v941_v20, %v566_v19  ;;  %v573_v20 = vld [vmem:[#allocation2 + $0x98] sm:$0xff] }
 0x245   : > { %992 = vst [vmem:[#allocation2 + $0xb0] sm:$0xff] %v960_v55 }
 0x246   : > { %1016 = vst [vmem:[#allocation2 + $0xa8] sm:$0xff] %v984_v21 }
 0x248   : > { %v882_v60 = vpop.f32.mrf.mxu2  ;;  %v942_v25 = vpop.f32.mrf.mxu3 }
 0x249   : > { %v883_v63 = vadd.f32 %v882_v60, %v793_v31  ;;  %v943_v28 = vadd.f32 %v942_v25, %v2032_v32  ;;  %v548_v32 = vld [vmem:[#allocation2 + $0x30] sm:$0xff]  ;;  %v553_v25 = vld [vmem:[#allocation2 + $0xb8] sm:$0xff] }
 0x24b   : > { %v961_v3 = vadd.f32 %v883_v63, %v543_v59  ;;  %v985_v31 = vadd.f32 %v943_v28, %v567_v27  ;;  %v550_v63 = vld [vmem:[#allocation2 + $0x80] sm:$0xff] }
 0x24d   : > { %993 = vst [vmem:[#allocation2] sm:$0xff] %v961_v3  ;;  %924 = vmatmul.bf16.gmra.mxu2 %v1369_v0 }
 0x24e   : > { %1017 = vst [vmem:[#allocation2 + $0xd0] sm:$0xff] %v985_v31 }
 0x250   : > { %v885_v6 = vpop.f32.mrf.mxu2  ;;  %v945_v39 = vpop.f32.mrf.mxu3 }
 0x251   : > { %v886_v7 = vadd.f32 %v885_v6, %v796_v35  ;;  %v547_v35 = vld [vmem:[#allocation2 + $0x68] sm:$0xff]  ;;  %v946_v44 = vadd.f32 %v945_v39, %v2036_v36  ;;  %v570_v36 = vld [vmem:[#allocation2 + $0xa0] sm:$0xff] }
 0x252   : > { %v556_v39 = vld [vmem:[#allocation2 + $0x8] sm:$0xff] }
 0x253   : > { %v962_v9 = vadd.f32 %v886_v7, %v544_v5  ;;  %v986_v46 = vadd.f32 %v946_v44, %v568_v43 }
 0x255   : > { %994 = vst [vmem:[#allocation2 + $0xd8] sm:$0xff] %v962_v9  ;;  %v551_v9 = vld [vmem:[#allocation2 + $0x88] sm:$0xff] }
 0x256   : > { %1018 = vst [vmem:[#allocation2 + $0x10] sm:$0xff] %v986_v46  ;;  %v557_v46 = vld [vmem:[#allocation2 + $0x78] sm:$0xff] }
 0x258   : > { %v887_v13 = vpop.f32.mrf.mxu2  ;;  %v947_v49 = vpop.f32.mrf.mxu3 }
 0x259   : > { %v888_v15 = vadd.f32 %v887_v13, %v798_v41  ;;  %v813_v41 = vpop.f32.mrf.mxu1  ;;  %v948_v51 = vadd.f32 %v947_v49, %v2040_v42 }
 0x25b   : > { %v963_v18 = vadd.f32 %v888_v15, %v545_v12 }
 0x25d   : > { %995 = vst [vmem:[#allocation2 + $0x18] sm:$0xff] %v963_v18  ;;  %929 = vmatmul.bf16.gmra.mxu2 %v1377_v16 }
 0x260   : > { %v890_v23 = vpop.f32.mrf.mxu2  ;;  %v950_v59 = vpop.f32.mrf.mxu3 }
 0x261   : > { %v891_v24 = vadd.f32 %v890_v23, %v801_v50  ;;  %v569_v50 = vld [vmem:[#allocation2 + $0x28] sm:$0xff]  ;;  %v816_v55 = vpop.f32.mrf.mxu1  ;;  %v951_v61 = vadd.f32 %v950_v59, %v2044_v45 }
 0x262   : > { %v987_v53 = vadd.f32 %v948_v51, %v569_v50  ;;  %v558_v50 = vld [vmem:[#allocation2 + $0x38] sm:$0xff] }
 0x263   : > { %v964_v30 = vadd.f32 %v891_v24, %v546_v22  ;;  %v988_v62 = vadd.f32 %v951_v61, %v570_v36  ;;  %v560_v36 = vld [vmem:[#allocation2 + $0x40] sm:$0xff] }
 0x264   : > { %1019 = vst [vmem:[#allocation2 + $0x28] sm:$0xff] %v987_v53 }
 0x265   : > { %996 = vst [vmem:[#allocation2 + $0x50] sm:$0xff] %v964_v30  ;;  %v554_v30 = vld [vmem:[#allocation2 + $0x60] sm:$0xff] }
 0x266   : > { %1020 = vst [vmem:[#allocation2 + $0xa0] sm:$0xff] %v988_v62 }
 0x268   : > { %v892_v37 = vpop.f32.mrf.mxu2  ;;  %v952_v42 = vpop.f32.mrf.mxu3 }
 0x269   : > { %v893_v38 = vadd.f32 %v892_v37, %v803_v56  ;;  %v549_v56 = vld [vmem:[#allocation2 + $0x48] sm:$0xff]  ;;  %v818_v2 = vpop.f32.mrf.mxu1  ;;  %v953_v5 = vadd.f32 %v952_v42, %v2048_v54 }
 0x26b   : > { %v965_v40 = vadd.f32 %v893_v38, %v547_v35  ;;  %v555_v35 = vld [vmem:[#allocation2 + $0xf0] sm:$0xff] }
 0x26d   : > { %997 = vst [vmem:[#allocation2 + $0x68] sm:$0xff] %v965_v40  ;;  %934 = vmatmul.bf16.gmra.mxu2 %v1385_v29 }
 0x270   : > { %v895_v47 = vpop.f32.mrf.mxu2  ;;  %v955_v12 = vpop.f32.mrf.mxu3 }
 0x271   : > { %v896_v48 = vadd.f32 %v895_v47, %v806_v4  ;;  %v571_v4 = vld [vmem:[#allocation2 + $0xf8] sm:$0xff]  ;;  %v821_v13 = vpop.f32.mrf.mxu1  ;;  %v956_v15 = vadd.f32 %v955_v12, %v2054_v1 }
 0x272   : > { %v989_v7 = vadd.f32 %v953_v5, %v571_v4  ;;  %v562_v5 = vld [vmem:[#allocation2 + $0xe0] sm:$0xff] }
 0x273   : > { %v966_v52 = vadd.f32 %v896_v48, %v548_v32 }
 0x274   : > { %1021 = vst [vmem:[#allocation2 + $0xf8] sm:$0xff] %v989_v7 }
 0x275   : > { %998 = vst [vmem:[#allocation2 + $0x30] sm:$0xff] %v966_v52 }
 0x278   : > { %v897_v57 = vpop.f32.mrf.mxu2  ;;  %v957_v54 = vpop.f32.mrf.mxu3 }
 0x279   : > { %v898_v58 = vadd.f32 %v897_v57, %v808_v14  ;;  %v572_v14 = vld [vmem:[#allocation2 + $0x20] sm:$0xff]  ;;  %v958_v21 = vadd.f32 %v957_v54, %v2056_v8  ;;  %v823_v23 = vpop.f32.mrf.mxu1 }
 0x27a   : > { %v990_v16 = vadd.f32 %v956_v15, %v572_v14  ;;  %v564_v15 = vld [vmem:[#allocation2 + $0x70] sm:$0xff]  ;;  %v565_v54 = vld [vmem:[#allocation2 + $0xc0] sm:$0xff] }
 0x27b   : > { %v967_v60 = vadd.f32 %v898_v58, %v549_v56  ;;  %v991_v24 = vadd.f32 %v958_v21, %v573_v20  ;;  %v559_v56 = vld [vmem:[#allocation2 + $0x58] sm:$0xff] }
 0x27c   : > { %1022 = vst [vmem:[#allocation2 + $0x20] sm:$0xff] %v990_v16 }
 0x27d   : > { %999 = vst [vmem:[#allocation2 + $0x48] sm:$0xff] %v967_v60 }
 0x27e   : > { %1023 = vst [vmem:[#allocation2 + $0x98] sm:$0xff] %v991_v24 }
 0x280   : > { %v900_v0 = vpop.f32.mrf.mxu2 }
 0x281   : > { %v901_v3 = vadd.f32 %v900_v0, %v811_v26  ;;  %v826_v1 = vpop.f32.mrf.mxu1  ;;  %v561_v0 = vld [vmem:[#allocation2 + $0xc8] sm:$0xff] }
 0x283   : > { %v968_v6 = vadd.f32 %v901_v3, %v550_v63 }
 0x285   : > { %1000 = vst [vmem:[#allocation2 + $0x80] sm:$0xff] %v968_v6 }
 0x288   : > { %v902_v10 = vpop.f32.mrf.mxu2 }
 0x289   : > { %v903_v11 = vadd.f32 %v902_v10, %v813_v41  ;;  %v828_v38 = vpop.f32.mrf.mxu1 }
 0x28b   : > { %v969_v45 = vadd.f32 %v903_v11, %v551_v9  ;;  %v563_v11 = vld [vmem:[#allocation2 + $0x90] sm:$0xff] }
 0x28d   : > { %1001 = vst [vmem:[#allocation2 + $0x88] sm:$0xff] %v969_v45 }
 0x290   : > { %v905_v18 = vpop.f32.mrf.mxu2 }
 0x291   : > { %v906_v19 = vadd.f32 %v905_v18, %v816_v55  ;;  %v831_v43 = vpop.f32.mrf.mxu1 }
 0x293   : > { %v970_v22 = vadd.f32 %v906_v19, %v552_v17 }
 0x295   : > { %1002 = vst [vmem:[#allocation2 + $0xe8] sm:$0xff] %v970_v22 }
 0x298   : > { %v907_v26 = vpop.f32.mrf.mxu2 }
 0x299   : > { %v908_v27 = vadd.f32 %v907_v26, %v818_v2  ;;  %v833_v49 = vpop.f32.mrf.mxu1 }
 0x29b   : > { %v971_v28 = vadd.f32 %v908_v27, %v553_v25 }
 0x29d   : > { %1003 = vst [vmem:[#allocation2 + $0xb8] sm:$0xff] %v971_v28 }
 0x2a0   : > { %v910_v31 = vpop.f32.mrf.mxu2 }
 0x2a1   : > { %v911_v33 = vadd.f32 %v910_v31, %v821_v13  ;;  %v836_v55 = vpop.f32.mrf.mxu1 }
 0x2a3   : > { %v972_v34 = vadd.f32 %v911_v33, %v554_v30 }
 0x2a5   : > { %1004 = vst [vmem:[#allocation2 + $0x60] sm:$0xff] %v972_v34 }
 0x2a8   : > { %v912_v37 = vpop.f32.mrf.mxu2 }
 0x2a9   : > { %v913_v8 = vadd.f32 %v912_v37, %v823_v23  ;;  %v838_v60 = vpop.f32.mrf.mxu1 }
 0x2ab   : > { %v973_v29 = vadd.f32 %v913_v8, %v555_v35 }
 0x2ad   : > { %1005 = vst [vmem:[#allocation2 + $0xf0] sm:$0xff] %v973_v29 }
 0x2b0   : > { %v915_v40 = vpop.f32.mrf.mxu2 }
 0x2b1   : > { %v916_v41 = vadd.f32 %v915_v40, %v826_v1  ;;  %v841_v42 = vpop.f32.mrf.mxu1 }
 0x2b3   : > { %v974_v44 = vadd.f32 %v916_v41, %v556_v39 }
 0x2b5   : > { %1006 = vst [vmem:[#allocation2 + $0x8] sm:$0xff] %v974_v44 }
 0x2b8   : > { %v917_v32 = vpop.f32.mrf.mxu2 }
 0x2b9   : > { %v918_v47 = vadd.f32 %v917_v32, %v828_v38  ;;  %v843_v10 = vpop.f32.mrf.mxu1 }
 0x2bb   : > { %v975_v48 = vadd.f32 %v918_v47, %v557_v46 }
 0x2bd   : > { %1007 = vst [vmem:[#allocation2 + $0x78] sm:$0xff] %v975_v48 }
 0x2c0   : > { %v920_v51 = vpop.f32.mrf.mxu2 }
 0x2c1   : > { %v921_v52 = vadd.f32 %v920_v51, %v831_v43  ;;  %v846_v14 = vpop.f32.mrf.mxu1 }
 0x2c3   : > { %v976_v53 = vadd.f32 %v921_v52, %v558_v50 }
 0x2c5   : > { %1008 = vst [vmem:[#allocation2 + $0x38] sm:$0xff] %v976_v53 }
 0x2c8   : > { %v922_v57 = vpop.f32.mrf.mxu2 }
 0x2c9   : > { %v923_v58 = vadd.f32 %v922_v57, %v833_v49  ;;  %v848_v19 = vpop.f32.mrf.mxu1 }
 0x2cb   : > { %v977_v59 = vadd.f32 %v923_v58, %v559_v56 }
 0x2cd   : > { %1009 = vst [vmem:[#allocation2 + $0x58] sm:$0xff] %v977_v59 }
 0x2d0   : > { %v925_v61 = vpop.f32.mrf.mxu2 }
 0x2d1   : > { %v926_v62 = vadd.f32 %v925_v61, %v836_v55 }
 0x2d3   : > { %v978_v63 = vadd.f32 %v926_v62, %v560_v36 }
 0x2d5   : > { %1010 = vst [vmem:[#allocation2 + $0x40] sm:$0xff] %v978_v63 }
 0x2d8   : > { %v927_v2 = vpop.f32.mrf.mxu2 }
 0x2d9   : > { %v928_v3 = vadd.f32 %v927_v2, %v838_v60 }
 0x2db   : > { %v979_v4 = vadd.f32 %v928_v3, %v561_v0 }
 0x2dd   : > { %1011 = vst [vmem:[#allocation2 + $0xc8] sm:$0xff] %v979_v4 }
 0x2e0   : > { %v930_v6 = vpop.f32.mrf.mxu2 }
 0x2e1   : > { %v931_v7 = vadd.f32 %v930_v6, %v841_v42 }
 0x2e3   : > { %v980_v9 = vadd.f32 %v931_v7, %v562_v5 }
 0x2e5   : > { %1012 = vst [vmem:[#allocation2 + $0xe0] sm:$0xff] %v980_v9 }
 0x2e8   : > { %v932_v12 = vpop.f32.mrf.mxu2 }
 0x2e9   : > { %v933_v13 = vadd.f32 %v932_v12, %v843_v10 }
 0x2eb   : > { %v981_v45 = vadd.f32 %v933_v13, %v563_v11 }
 0x2ed   : > { %1013 = vst [vmem:[#allocation2 + $0x90] sm:$0xff] %v981_v45 }
 0x2f0   : > { %v935_v16 = vpop.f32.mrf.mxu2 }
 0x2f1   : > { %v936_v17 = vadd.f32 %v935_v16, %v846_v14 }
 0x2f3   : > { %v982_v18 = vadd.f32 %v936_v17, %v564_v15 }
 0x2f5   : > { %1014 = vst [vmem:[#allocation2 + $0x70] sm:$0xff] %v982_v18 }
 0x2f8   : > { %v937_v20 = vpop.f32.mrf.mxu2 }
 0x2f9   : > { %v938_v21 = vadd.f32 %v937_v20, %v848_v19  ;;  %1027 = sbr.rel (%p1418_p7) target bundleno = 801 (0x321), region = 48 }
 0x2fb   : > { %v983_v22 = vadd.f32 %v938_v21, %v565_v54 }
 0x2fd   : > { %1015 = vst [vmem:[#allocation2 + $0xc0] sm:$0xff] %v983_v22 }
 0x2fe   : > { %v1028_v23 = vld [vmem:[#allocation2 + $0xb0] sm:$0xff]  ;;  %v2074_v24 = vld [vmem:[%s2197_s3] ss:$0 sm:$0xff]  ;;  %v1030_v26 = vld [vmem:[#allocation2 + $0xd8] sm:$0xff] }
 0x2ff   : > { %v1029_v25 = vld [vmem:[#allocation2] sm:$0xff]  ;;  %v1031_v27 = vld [vmem:[#allocation2 + $0x18] sm:$0xff]  ;;  %v1064_v28 = vadd.f32 %v2074_v24, %v1028_v23  ;;  %v1066_v30 = vadd.f32 %v2074_v24, %v1030_v26  ;;  %v1032_v31 = vld [vmem:[#allocation2 + $0x50] sm:$0xff] }
 0x300   : > { %v1065_v1 = vadd.f32 %v2074_v24, %v1029_v25  ;;  %v1033_v33 = vld [vmem:[#allocation2 + $0x68] sm:$0xff]  ;;  %v1067_v34 = vadd.f32 %v2074_v24, %v1031_v27  ;;  %v1034_v35 = vld [vmem:[#allocation2 + $0x30] sm:$0xff]  ;;  %v1068_v37 = vadd.f32 %v2074_v24, %v1032_v31  ;;  %v1036_v29 = vld [vmem:[#allocation2 + $0x80] sm:$0xff] }
 0x301   : > { %1096 = vst [vmem:[%s1897_s18] sm:$0xff] %v1064_v28  ;;  %v1035_v38 = vld [vmem:[#allocation2 + $0x48] sm:$0xff]  ;;  %v1069_v8 = vadd.f32 %v2074_v24, %v1033_v33  ;;  %v1070_v39 = vadd.f32 %v2074_v24, %v1034_v35  ;;  %v1072_v44 = vadd.f32 %v2074_v24, %v1036_v29  ;;  %v1039_v46 = vld [vmem:[#allocation2 + $0xb8] sm:$0xff]  ;;  %v1040_v47 = vld [vmem:[#allocation2 + $0x60] sm:$0xff] }
 0x302   : > { %1097 = vst [vmem:[%s1897_s18 + $0x8] sm:$0xff] %v1065_v1  ;;  %v1037_v40 = vld [vmem:[#allocation2 + $0x88] sm:$0xff]  ;;  %v1071_v41 = vadd.f32 %v2074_v24, %v1035_v38  ;;  %v1041_v49 = vld [vmem:[#allocation2 + $0xf0] sm:$0xff]  ;;  %v1075_v50 = vadd.f32 %v2074_v24, %v1039_v46  ;;  %v1076_v52 = vadd.f32 %v2074_v24, %v1040_v47  ;;  %v1043_v53 = vld [vmem:[#allocation2 + $0x78] sm:$0xff] }
 0x303   : > { %1098 = vst [vmem:[%s1897_s18 + $0x10] sm:$0xff] %v1066_v30  ;;  %v1038_v43 = vld [vmem:[#allocation2 + $0xe8] sm:$0xff]  ;;  %v1073_v32 = vadd.f32 %v2074_v24, %v1037_v40  ;;  %v1077_v55 = vadd.f32 %v2074_v24, %v1041_v49  ;;  %v1044_v56 = vld [vmem:[#allocation2 + $0x38] sm:$0xff]  ;;  %v1079_v59 = vadd.f32 %v2074_v24, %v1043_v53  ;;  %v1046_v60 = vld [vmem:[#allocation2 + $0x40] sm:$0xff] }
 0x304   : > { %1099 = vst [vmem:[%s1897_s18 + $0x18] sm:$0xff] %v1067_v34  ;;  %v1074_v48 = vadd.f32 %v2074_v24, %v1038_v43  ;;  %v1042_v51 = vld [vmem:[#allocation2 + $0x8] sm:$0xff]  ;;  %v1045_v58 = vld [vmem:[#allocation2 + $0x58] sm:$0xff]  ;;  %v1080_v36 = vadd.f32 %v2074_v24, %v1044_v56  ;;  %v1048_v63 = vld [vmem:[#allocation2 + $0xe0] sm:$0xff]  ;;  %v1082_v0 = vadd.f32 %v2074_v24, %v1046_v60 }
 0x305   : > { %1100 = vst [vmem:[%s1897_s18 + $0x20] sm:$0xff] %v1068_v37  ;;  %v1078_v57 = vadd.f32 %v2074_v24, %v1042_v51  ;;  %v1047_v61 = vld [vmem:[#allocation2 + $0xc8] sm:$0xff]  ;;  %v1081_v62 = vadd.f32 %v2074_v24, %v1045_v58  ;;  %v1049_v2 = vld [vmem:[#allocation2 + $0x90] sm:$0xff]  ;;  %v1084_v4 = vadd.f32 %v2074_v24, %v1048_v63  ;;  %v1051_v5 = vld [vmem:[#allocation2 + $0xc0] sm:$0xff] }
 0x306   : > { %1101 = vst [vmem:[%s1897_s18 + $0x28] sm:$0xff] %v1069_v8  ;;  %v1083_v3 = vadd.f32 %v2074_v24, %v1047_v61  ;;  %v1050_v42 = vld [vmem:[#allocation2 + $0x70] sm:$0xff]  ;;  %v1085_v6 = vadd.f32 %v2074_v24, %v1049_v2  ;;  %v1052_v7 = vld [vmem:[#allocation2 + $0xa8] sm:$0xff]  ;;  %v1087_v11 = vadd.f32 %v2074_v24, %v1051_v5  ;;  %v1056_v15 = vld [vmem:[#allocation2 + $0xa0] sm:$0xff] }
 0x307   : > { %1102 = vst [vmem:[%s1897_s18 + $0x30] sm:$0xff] %v1070_v39  ;;  %v1086_v9 = vadd.f32 %v2074_v24, %v1050_v42  ;;  %v1053_v10 = vld [vmem:[#allocation2 + $0xd0] sm:$0xff]  ;;  %v1088_v13 = vadd.f32 %v2074_v24, %v1052_v7  ;;  %v1055_v45 = vld [vmem:[#allocation2 + $0x28] sm:$0xff]  ;;  %v1057_v17 = vld [vmem:[#allocation2 + $0xf8] sm:$0xff]  ;;  %v1092_v54 = vadd.f32 %v2074_v24, %v1056_v15 }
 0x308   : > { %1103 = vst [vmem:[%s1897_s18 + $0x38] sm:$0xff] %v1071_v41  ;;  %v1054_v12 = vld [vmem:[#allocation2 + $0x10] sm:$0xff]  ;;  %v1089_v14 = vadd.f32 %v2074_v24, %v1053_v10  ;;  %v1091_v18 = vadd.f32 %v2074_v24, %v1055_v45  ;;  %v1058_v19 = vld [vmem:[#allocation2 + $0x20] sm:$0xff]  ;;  %v1059_v20 = vld [vmem:[#allocation2 + $0x98] sm:$0xff]  ;;  %v1093_v21 = vadd.f32 %v2074_v24, %v1057_v17 }
 0x309   : > { %1104 = vst [vmem:[%s1897_s18 + $0x40] sm:$0xff] %v1072_v44  ;;  %v1090_v16 = vadd.f32 %v2074_v24, %v1054_v12  ;;  %v1094_v22 = vadd.f32 %v2074_v24, %v1058_v19  ;;  %v1095_v23 = vadd.f32 %v2074_v24, %v1059_v20 }
 0x30a   : > { %1105 = vst [vmem:[%s1897_s18 + $0x48] sm:$0xff] %v1073_v32 }
 0x30b   : > { %1106 = vst [vmem:[%s1897_s18 + $0x50] sm:$0xff] %v1074_v48 }
 0x30c   : > { %1107 = vst [vmem:[%s1897_s18 + $0x58] sm:$0xff] %v1075_v50 }
 0x30d   : > { %1108 = vst [vmem:[%s1897_s18 + $0x60] sm:$0xff] %v1076_v52 }
 0x30e   : > { %1109 = vst [vmem:[%s1897_s18 + $0x68] sm:$0xff] %v1077_v55 }
 0x30f   : > { %1110 = vst [vmem:[%s1897_s18 + $0x70] sm:$0xff] %v1078_v57 }
 0x310   : > { %1111 = vst [vmem:[%s1897_s18 + $0x78] sm:$0xff] %v1079_v59 }
 0x311   : > { %1112 = vst [vmem:[%s1897_s18 + $0x80] sm:$0xff] %v1080_v36 }
 0x312   : > { %1113 = vst [vmem:[%s1897_s18 + $0x88] sm:$0xff] %v1081_v62 }
 0x313   : > { %1114 = vst [vmem:[%s1897_s18 + $0x90] sm:$0xff] %v1082_v0 }
 0x314   : > { %1115 = vst [vmem:[%s1897_s18 + $0x98] sm:$0xff] %v1083_v3 }
 0x315   : > { %1116 = vst [vmem:[%s1897_s18 + $0xa0] sm:$0xff] %v1084_v4 }
 0x316   : > { %1117 = vst [vmem:[%s1897_s18 + $0xa8] sm:$0xff] %v1085_v6 }
 0x317   : > { %1118 = vst [vmem:[%s1897_s18 + $0xb0] sm:$0xff] %v1086_v9 }
 0x318   : > { %1119 = vst [vmem:[%s1897_s18 + $0xb8] sm:$0xff] %v1087_v11 }
 0x319   : > { %1120 = vst [vmem:[%s1897_s18 + $0xc0] sm:$0xff] %v1088_v13 }
 0x31a   : > { %1121 = vst [vmem:[%s1897_s18 + $0xc8] sm:$0xff] %v1089_v14 }
 0x31b   : > { %1122 = vst [vmem:[%s1897_s18 + $0xd0] sm:$0xff] %v1090_v16 }
 0x31c   : > { %1123 = vst [vmem:[%s1897_s18 + $0xd8] sm:$0xff] %v1091_v18 }
 0x31d   : > { %1124 = vst [vmem:[%s1897_s18 + $0xe0] sm:$0xff] %v1092_v54 }
 0x31e   : > { %1125 = vst [vmem:[%s1897_s18 + $0xe8] sm:$0xff] %v1093_v21 }
 0x31f   : > { %1126 = vst [vmem:[%s1897_s18 + $0xf0] sm:$0xff] %v1094_v22 }
 0x320   : > { %1127 = vst [vmem:[%s1897_s18 + $0xf8] sm:$0xff] %v1095_v23 }
 0x321 PF: > { %s1457_s21 = sshll.u32 %s1727_s22, 8  ;;  %s1141_s29 = sshll.u32 %s1897_s18, 4  ;;  %s1142_s29 = int_to_ptr.vmem [resolvable:$true] %s1141_s29 }
 0x322   : > { %s1140_s23 = scalar_lea.hbm %s2198_s4, %s1457_s21  ;;  %s1129_s14 = scalar_lea.sflag [#allocation5], %s248_s13 }
 0x323   : > { %s1143_s12 = sshll.u32 %s1140_s23, 4  ;;  %s1637_s22 = scalar_lea.hbm %s2198_s4, 512  ;;  %s1144_s12 = int_to_ptr.hbm [resolvable:$true] %s1143_s12 }
 0x324   : > { %s1631_s8 = sshra.s32 %s1144_s12, 4  ;;  %s1632_s8 = int_to_ptr.hbm [resolvable:$true] %s1631_s8 }
 0x325   : > { %s1633_s9 = scalar_lea.hbm %s1632_s8, 256  ;;  %p1638_p0 = scmp.lt.s32.totalorder %s1632_s8, %s2198_s4 }
 0x326   : > { %p1634_p10 = scmp.ne.s32.totalorder %s1632_s8, %s1633_s9  ;;  %p1639_p1 = scmp.lt.s32.totalorder %s1637_s22, %s1633_s9 }
 0x328   : > { %p1635_p11 = pnand %p1634_p10, %p1854_p12  ;;  %p1640_p4 = por %p1639_p1, %p1638_p0 }
 0x32a   : > { %p1636_p13 = pneg %p1635_p11 }
 0x32c   : > { %p1641_p5 = pnand %p1640_p4, %p1636_p13 }
 0x32e   : > { %1644 = shalt.err (!%p1641_p5)
}
 0x32f   : > { %s1745_s13 = smov 128   ;;  %s1746_s18 = smov 8  }
 0x330   : > { %1480 = dma.vmem_to_hbm [thread:$0]  (%p1854_p12), %s1142_s29, 4096, %s1144_s12, %s1129_s14, %s1745_s13, %s1745_s13, %s1746_s18  }
 0x331 PF: > { %p1491_p6 = scmp.ge.s32.totalorder %s1739_s25, 2  ;;  %s1158_s6 = sand.u32 1, %s1699_s15  }
 0x332   : > { %s1159_s26 = scalar_lea.sflag [#allocation5], %s1158_s6 }
 0x333   : > { %p1487_p8 = pnand %p1491_p6, %p1867_p2 }
 0x335   : > { %p1488_p3 = pneg %p1487_p8 }
 0x337   : > { %1694 = dma.done.wait (%p1488_p3), %s1159_s26, 4096  }
 0x338   : > { %1696 = vsyncadd (%p1488_p3), %s1159_s26, 4294963200  ;;  %s20_s25 = sadd.s32 1, %s1739_s25   ;;  %s2218_s5 = sld [smem:[#allocation9_spill]] }
 0x339   : > { %p17_p9 = scmp.ge.s32.totalorder %s20_s25, 6   ;;  %s2219_s17 = sld [smem:[#allocation14_spill]] }
 0x33a   : > { %s2220_s11 = sld [smem:[#allocation10_spill]]  ;;  %s2225_s15 = smov %s1703_s16 }
 0x33b   : > { %s2221_s20 = sld [smem:[#allocation15_spill]]  ;;  %s2227_s18 = smov %s1715_s19 }
 0x33c   : > { %s2222_s21 = sld [smem:[#allocation11_spill]]  ;;  %s2229_s22 = smov %s1735_s24 }
 0x33d   : > { %s2223_s23 = sld [smem:[#allocation12_spill]] }
 0x33e   : > { %s2224_s29 = sld [smem:[#allocation13_spill]]  ;;  %s2226_s16 = smov %s2218_s5 }
 0x340   : > { %s2228_s19 = smov %s2220_s11  ;;  %19 = sbr.rel (!%p17_p9) target bundleno = 9 (0x9), region = 92 }
 0x344   : > { %s2230_s24 = smov %s2224_s29 }
 0x345   :  { %1165 = vsyncpa [#allocation4], 1 }
 0x346   :  { %1167 = vsyncpa [#allocation4 + $0x1], 1 }
 0x347   :  { %1168 = vsyncpa [#allocation5], 1 }
 0x348   :  { %1170 = vsyncpa [#allocation5 + $0x1], 1 }

</bundles_post_ra>
